<compile_context>
chip_gen: v5e
topology: v5e:2x2
jax: 0.10.0
libtpu: 0.0.40
codegen_flags: <defaults>
</compile_context>

<pallas_src>
import functools

import jax
import jax.numpy as jnp
from jax.experimental import pallas as pl
from jax.experimental.pallas import tpu as pltpu


def _round_up(x: int, m: int) -> int:
    return ((x + m - 1) // m) * m


def _choose_block_n(B, Q, S, D, itemsize, max_bn=256, budget_bytes=20 * 1024 * 1024):
    """Pick the largest power-of-two doc-block size that fits a conservative VMEM budget."""
    bn = max_bn
    while bn > 8:
        need = 2 * bn * S * D * itemsize          # doc block (double buffered)
        need += 2 * bn * S * 4                    # doc mask block (int32, double buffered)
        need += 2 * bn * 4                        # qidx block
        need += bn * Q * D * max(itemsize, 2)     # gathered-query scratch
        need += bn * Q * S * 4                    # f32 similarity tile
        need += bn * (Q + 8) * 4                  # per-query maxima / misc
        need += 2 * B * Q * D * itemsize + 2 * B * Q * 4   # resident queries + mask
        if need <= budget_bytes:
            return bn
        bn //= 2
    return 8


def _scoring_kernel(q_ref, qmask_ref, d_ref, dmask_ref, qidx_ref,
                    o_ref, qsel_ref, *, similarity: str, aggregation: str):
    """One grid step = one block of BN (query, doc) pairs.

    q_ref:     (B, Q, D)  all query embeddings (resident in VMEM, native dtype)
    qmask_ref: (B, Q)     float32 query scoring mask (1.0 = keep)
    d_ref:     (BN, S, D) doc embeddings for this block (native dtype)
    dmask_ref: (BN, S)    int32 doc scoring mask (nonzero = keep)
    qidx_ref:  (BN, 1)    int32 index of the query each doc belongs to
    o_ref:     (BN, 1)    float32 scores for this block
    qsel_ref:  (BN, Q, D) VMEM scratch for the gathered per-doc query embeddings
    """
    BN = d_ref.shape[0]
    B, Q, D = q_ref.shape

    # one-hot selector: sel[n, b] = 1 iff doc n belongs to query b
    qidx = qidx_ref[...]                                         # (BN, 1) int32
    iota_b = jax.lax.broadcasted_iota(jnp.int32, (BN, B), 1)     # (BN, B)
    sel_bool = qidx == iota_b                                    # (BN, B)
    sel_e = sel_bool.astype(q_ref.dtype)
    sel_f = sel_bool.astype(jnp.float32)

    # Gather the query embeddings for every doc in the block via tiny MXU matmuls.
    # Stays entirely in VMEM -> no HBM repeat_interleave traffic.
    for t in range(Q):
        gathered = jax.lax.dot_general(
            sel_e, q_ref[:, t, :], (((1,), (0,)), ((), ())),
            preferred_element_type=jnp.float32)                  # (BN, D)
        qsel_ref[:, t, :] = gathered.astype(qsel_ref.dtype)

    q_sel = qsel_ref[...]                                        # (BN, Q, D)
    d = d_ref[...]                                               # (BN, S, D)

    # token-token inner products on the MXU, contracting D, f32 accumulation
    dots = jnp.einsum("nqd,nsd->nqs", q_sel, d,
                      preferred_element_type=jnp.float32)        # (BN, Q, S)

    if similarity == "dot":
        sim = dots
    elif similarity == "cosine":
        qn = jnp.sqrt(jnp.sum(q_sel.astype(jnp.float32) ** 2, axis=-1))   # (BN, Q)
        dn = jnp.sqrt(jnp.sum(d.astype(jnp.float32) ** 2, axis=-1))       # (BN, S)
        denom = jnp.maximum(qn, 1e-8)[:, :, None] * jnp.maximum(dn, 1e-8)[:, None, :]
        sim = dots / denom
    elif similarity == "l2":
        q2 = jnp.sum(q_sel.astype(jnp.float32) ** 2, axis=-1)             # (BN, Q)
        d2 = jnp.sum(d.astype(jnp.float32) ** 2, axis=-1)                 # (BN, S)
        dist2 = jnp.maximum(q2[:, :, None] + d2[:, None, :] - 2.0 * dots, 0.0)
        sim = -jnp.sqrt(dist2)
    else:
        raise ValueError(f"Unknown similarity function {similarity}")

    # masked 'max' aggregation over doc tokens (dim -1)
    dmask = (dmask_ref[...] > 0)[:, None, :]                     # (BN, 1, S)
    sim = jnp.where(dmask, sim, -jnp.inf)
    per_q = jnp.max(sim, axis=-1)                                # (BN, Q)

    # gather the query scoring mask per doc (exact one-hot matmul)
    qm = jax.lax.dot_general(sel_f, qmask_ref[...], (((1,), (0,)), ((), ())),
                             preferred_element_type=jnp.float32)  # (BN, Q)
    qmask = qm > 0.5

    # query-token aggregation (dim -2 in the original layout)
    if aggregation == "sum":
        score = jnp.sum(jnp.where(qmask, per_q, 0.0), axis=-1, keepdims=True)
    elif aggregation == "max":
        score = jnp.max(jnp.where(qmask, per_q, -jnp.inf), axis=-1, keepdims=True)
    elif aggregation == "mean":
        # faithful to the PyTorch code: the sum is over ALL positions,
        # only the denominator uses the mask.
        n = jnp.sum(qm, axis=-1, keepdims=True)
        s = jnp.sum(per_q, axis=-1, keepdims=True)
        score = jnp.where(n == 0, 0.0, s / n)
    elif aggregation == "harmonic_mean":
        n = jnp.sum(qm, axis=-1, keepdims=True)
        s = jnp.sum(1.0 / per_q, axis=-1, keepdims=True)
        score = jnp.where(n == 0, 0.0, n / s)
    else:
        raise ValueError(f"Unknown aggregation {aggregation}")

    o_ref[...] = score                                           # (BN, 1)


def scoring_function_forward(query_embeddings, query_scoring_mask,
                             doc_embeddings, doc_scoring_mask,
                             num_docs=None, *,
                             similarity_function: str = "dot",
                             query_aggregation_function: str = "sum",
                             block_n: int | None = None):
    """Pallas implementation of ScoringFunction.forward.

    query_embeddings:   (B, Q, D) float
    query_scoring_mask: (B, Q)    bool
    doc_embeddings:     (N, S, D) float, N = sum(num_docs)
    doc_scoring_mask:   (N, S)    bool
    returns: (N,) scores, dtype of query_embeddings
    """
    B, Q, D = query_embeddings.shape
    N, S, D2 = doc_embeddings.shape
    assert D == D2

    # parse_num_docs
    if isinstance(num_docs, int):
        num_docs = [num_docs] * B
    if num_docs is None:
        if N % B != 0:
            raise ValueError("Docs are not evenly distributed, but no num_docs provided")
        num_docs = [N // B] * B
    num_docs = list(num_docs)
    if sum(num_docs) != N or len(num_docs) != B:
        raise ValueError("Num docs does not match doc embeddings")
    nd = jnp.asarray(num_docs, dtype=jnp.int32)

    # per-doc query index (tiny: N int32s) — replaces the N*Q*D repeat_interleave
    qidx = jnp.repeat(jnp.arange(B, dtype=jnp.int32), nd, axis=0,
                      total_repeat_length=N)[:, None]             # (N, 1)

    itemsize = jnp.dtype(query_embeddings.dtype).itemsize
    if block_n is None:
        block_n = _choose_block_n(B, Q, S, D, itemsize)
    BN = max(8, (min(block_n, _round_up(N, 8)) // 8) * 8)
    num_blocks = -(-N // BN)
    n_pad = num_blocks * BN
    pad = n_pad - N

    docs = doc_embeddings
    dmask = doc_scoring_mask.astype(jnp.int32)                    # (N, S) compact 2-D mask
    qmask_f = query_scoring_mask.astype(jnp.float32)              # (B, Q)
    if pad:
        docs = jnp.pad(docs, ((0, pad), (0, 0), (0, 0)))
        dmask = jnp.pad(dmask, ((0, pad), (0, 0)))                # padded docs fully masked
        qidx = jnp.pad(qidx, ((0, pad), (0, 0)))                  # padded docs -> query 0

    kernel = functools.partial(_scoring_kernel,
                               similarity=similarity_function,
                               aggregation=query_aggregation_function)

    out = pl.pallas_call(
        kernel,
        out_shape=jax.ShapeDtypeStruct((n_pad, 1), jnp.float32),
        grid_spec=pltpu.PrefetchScalarGridSpec(
            num_scalar_prefetch=0,
            grid=(num_blocks,),
            in_specs=[
                pl.BlockSpec((B, Q, D), lambda i: (0, 0, 0)),     # queries (VMEM resident)
                pl.BlockSpec((B, Q), lambda i: (0, 0)),           # query mask
                pl.BlockSpec((BN, S, D), lambda i: (i, 0, 0)),    # doc block
                pl.BlockSpec((BN, S), lambda i: (i, 0)),          # doc mask block
                pl.BlockSpec((BN, 1), lambda i: (i, 0)),          # per-doc query index
            ],
            out_specs=pl.BlockSpec((BN, 1), lambda i: (i, 0)),
            scratch_shapes=[pltpu.VMEM((BN, Q, D), query_embeddings.dtype)],
        ),
        compiler_params=pltpu.CompilerParams(
            dimension_semantics=("parallel",)),
    )(query_embeddings, qmask_f, docs, dmask, qidx)

    return out[:N, 0].astype(query_embeddings.dtype)


def _reference_forward(query_embeddings, query_scoring_mask,
                       doc_embeddings, doc_scoring_mask, num_docs):
    """Pure-JAX reference for 'dot' similarity + 'sum' query aggregation."""
    nd = jnp.asarray(num_docs, dtype=jnp.int32)
    N = doc_embeddings.shape[0]
    q_exp = jnp.repeat(query_embeddings, nd, axis=0, total_repeat_length=N)
    qm_exp = jnp.repeat(query_scoring_mask, nd, axis=0, total_repeat_length=N)
    sim = jnp.einsum("nqd,nsd->nqs", q_exp.astype(jnp.float32),
                     doc_embeddings.astype(jnp.float32))
    sim = jnp.where(doc_scoring_mask[:, None, :], sim, -jnp.inf)
    per_q = jnp.max(sim, axis=-1)
    per_q = jnp.where(qm_exp, per_q, 0.0)
    return jnp.sum(per_q, axis=-1)


if __name__ == "__main__":
    key = jax.random.PRNGKey(0)
    k1, k2, k3, k4 = jax.random.split(key, 4)

    # --- case 1: small ragged batch, single block --------------------------------
    B, Q, S, D = 2, 8, 16, 32
    num_docs = [3, 2]
    N = sum(num_docs)

    query_emb = jax.random.normal(k1, (B, Q, D), dtype=jnp.float32)
    doc_emb = jax.random.normal(k2, (N, S, D), dtype=jnp.float32)
    query_mask = jax.random.uniform(k3, (B, Q)) > 0.3
    query_mask = query_mask.at[:, 0].set(True)
    doc_mask = jax.random.uniform(k4, (N, S)) > 0.3
    doc_mask = doc_mask.at[:, 0].set(True)

    scores = scoring_function_forward(
        query_emb, query_mask, doc_emb, doc_mask, num_docs,
        similarity_function="dot", query_aggregation_function="sum")
    scores = jax.block_until_ready(scores)
    ref = _reference_forward(query_emb, query_mask, doc_emb, doc_mask, num_docs)
    assert scores.shape == (N,)
    assert jnp.allclose(scores, ref, atol=1e-3, rtol=1e-3), (scores, ref)

    # --- case 2: more docs, forced small block -> multi-block grid + padding ------
    k5, k6, k7, k8 = jax.random.split(jax.random.PRNGKey(1), 4)
    num_docs2 = [9, 8]
    N2 = sum(num_docs2)
    query_emb2 = jax.random.normal(k5, (B, Q, D), dtype=jnp.float32)
    doc_emb2 = jax.random.normal(k6, (N2, S, D), dtype=jnp.float32)
    query_mask2 = jax.random.uniform(k7, (B, Q)) > 0.3
    query_mask2 = query_mask2.at[:, 0].set(True)
    doc_mask2 = jax.random.uniform(k8, (N2, S)) > 0.3
    doc_mask2 = doc_mask2.at[:, 0].set(True)

    scores2 = scoring_function_forward(
        query_emb2, query_mask2, doc_emb2, doc_mask2, num_docs2,
        similarity_function="dot", query_aggregation_function="sum",
        block_n=8)
    scores2 = jax.block_until_ready(scores2)
    ref2 = _reference_forward(query_emb2, query_mask2, doc_emb2, doc_mask2, num_docs2)
    assert scores2.shape == (N2,)
    assert jnp.allclose(scores2, ref2, atol=1e-3, rtol=1e-3), (scores2, ref2)

    print("KERNEL_OK")
</pallas_src>

<mosaic_0001>
module attributes {stable_mosaic.version = 11 : i64} {
  func.func @_scoring_kernel(%arg0: i32, %arg1: memref<2x8x32xf32, #tpu.memory_space<vmem>>, %arg2: memref<2x8xf32, #tpu.memory_space<vmem>>, %arg3: memref<8x16x32xf32, #tpu.memory_space<vmem>>, %arg4: memref<8x16xi32, #tpu.memory_space<vmem>>, %arg5: memref<8x1xi32, #tpu.memory_space<vmem>>, %arg6: memref<8x1xf32, #tpu.memory_space<vmem>>, %arg7: memref<8x8x32xf32, #tpu.memory_space<vmem>>) attributes {dimension_semantics = [#tpu.dimension_semantics<parallel>], iteration_bounds = array<i64: 1>, scalar_prefetch = 0 : i64, scratch_operands = 1 : i64, tpu.core_type = #tpu.core_type<tc>, window_params = [{pipeline_mode = #tpu.pipeline_mode<synchronous>, transform_indices = @transform_0, window_bounds = array<i64: 2, 8, 32>}, {pipeline_mode = #tpu.pipeline_mode<synchronous>, transform_indices = @transform_1, window_bounds = array<i64: 2, 8>}, {transform_indices = @transform_2, window_bounds = array<i64: 8, 16, 32>}, {transform_indices = @transform_3, window_bounds = array<i64: 8, 16>}, {transform_indices = @transform_4, window_bounds = array<i64: 8, 1>}, {transform_indices = @transform_5, window_bounds = array<i64: 8, 1>}]} {
    %c0 = arith.constant 0 : index
    %c0_0 = arith.constant 0 : index
    %0 = vector.load %arg5[%c0, %c0_0] : memref<8x1xi32, #tpu.memory_space<vmem>>, vector<8x1xi32>
    %1 = tpu.iota {dimensions = array<i32: 1>} : vector<8x2xi32>
    %2 = vector.broadcast %0 : vector<8x1xi32> to vector<8x2xi32>
    %3 = arith.cmpi eq, %2, %1 : vector<8x2xi32>
    %4 = arith.extui %3 : vector<8x2xi1> to vector<8x2xi32>
    %5 = arith.sitofp %4 : vector<8x2xi32> to vector<8x2xf32>
    %6 = arith.extui %3 : vector<8x2xi1> to vector<8x2xi32>
    %7 = arith.sitofp %6 : vector<8x2xi32> to vector<8x2xf32>
    %c0_1 = arith.constant 0 : index
    %c0_2 = arith.constant 0 : index
    %c0_3 = arith.constant 0 : index
    %8 = vector.load %arg1[%c0_1, %c0_2, %c0_3] : memref<2x8x32xf32, #tpu.memory_space<vmem>>, vector<2x1x32xf32>
    %9 = vector.shape_cast %8 : vector<2x1x32xf32> to vector<2x32xf32>
    %cst = arith.constant dense<0.000000e+00> : vector<8x32xf32>
    %10 = tpu.matmul %5, %9, %cst {dimension_numbers = #tpu.dot_dimension_numbers<[1], [0], [0], [1], [0, 0, 1, 1], [], []>} : vector<8x2xf32>, vector<2x32xf32>, vector<8x32xf32> -> vector<8x32xf32>
    %c0_4 = arith.constant 0 : index
    %c0_5 = arith.constant 0 : index
    %c0_6 = arith.constant 0 : index
    %11 = vector.load %arg7[%c0_4, %c0_5, %c0_6] : memref<8x8x32xf32, #tpu.memory_space<vmem>>, vector<8x1x32xf32>
    %12 = vector.shape_cast %11 : vector<8x1x32xf32> to vector<8x32xf32>
    %13 = vector.shape_cast %10 : vector<8x32xf32> to vector<8x1x32xf32>
    tpu.vector_store %arg7[%c0_4, %c0_5, %c0_6], %13 {strides = array<i32>} : memref<8x8x32xf32, #tpu.memory_space<vmem>>, vector<8x1x32xf32>,
    %c0_7 = arith.constant 0 : index
    %c1 = arith.constant 1 : index
    %c0_8 = arith.constant 0 : index
    %14 = vector.load %arg1[%c0_7, %c1, %c0_8] : memref<2x8x32xf32, #tpu.memory_space<vmem>>, vector<2x1x32xf32>
    %15 = vector.shape_cast %14 : vector<2x1x32xf32> to vector<2x32xf32>
    %cst_9 = arith.constant dense<0.000000e+00> : vector<8x32xf32>
    %16 = tpu.matmul %5, %15, %cst_9 {dimension_numbers = #tpu.dot_dimension_numbers<[1], [0], [0], [1], [0, 0, 1, 1], [], []>} : vector<8x2xf32>, vector<2x32xf32>, vector<8x32xf32> -> vector<8x32xf32>
    %c0_10 = arith.constant 0 : index
    %c1_11 = arith.constant 1 : index
    %c0_12 = arith.constant 0 : index
    %17 = vector.load %arg7[%c0_10, %c1_11, %c0_12] : memref<8x8x32xf32, #tpu.memory_space<vmem>>, vector<8x1x32xf32>
    %18 = vector.shape_cast %17 : vector<8x1x32xf32> to vector<8x32xf32>
    %19 = vector.shape_cast %16 : vector<8x32xf32> to vector<8x1x32xf32>
    tpu.vector_store %arg7[%c0_10, %c1_11, %c0_12], %19 {strides = array<i32>} : memref<8x8x32xf32, #tpu.memory_space<vmem>>, vector<8x1x32xf32>,
    %c0_13 = arith.constant 0 : index
    %c2 = arith.constant 2 : index
    %c0_14 = arith.constant 0 : index
    %20 = vector.load %arg1[%c0_13, %c2, %c0_14] : memref<2x8x32xf32, #tpu.memory_space<vmem>>, vector<2x1x32xf32>
    %21 = vector.shape_cast %20 : vector<2x1x32xf32> to vector<2x32xf32>
    %cst_15 = arith.constant dense<0.000000e+00> : vector<8x32xf32>
    %22 = tpu.matmul %5, %21, %cst_15 {dimension_numbers = #tpu.dot_dimension_numbers<[1], [0], [0], [1], [0, 0, 1, 1], [], []>} : vector<8x2xf32>, vector<2x32xf32>, vector<8x32xf32> -> vector<8x32xf32>
    %c0_16 = arith.constant 0 : index
    %c2_17 = arith.constant 2 : index
    %c0_18 = arith.constant 0 : index
    %23 = vector.load %arg7[%c0_16, %c2_17, %c0_18] : memref<8x8x32xf32, #tpu.memory_space<vmem>>, vector<8x1x32xf32>
    %24 = vector.shape_cast %23 : vector<8x1x32xf32> to vector<8x32xf32>
    %25 = vector.shape_cast %22 : vector<8x32xf32> to vector<8x1x32xf32>
    tpu.vector_store %arg7[%c0_16, %c2_17, %c0_18], %25 {strides = array<i32>} : memref<8x8x32xf32, #tpu.memory_space<vmem>>, vector<8x1x32xf32>,
    %c0_19 = arith.constant 0 : index
    %c3 = arith.constant 3 : index
    %c0_20 = arith.constant 0 : index
    %26 = vector.load %arg1[%c0_19, %c3, %c0_20] : memref<2x8x32xf32, #tpu.memory_space<vmem>>, vector<2x1x32xf32>
    %27 = vector.shape_cast %26 : vector<2x1x32xf32> to vector<2x32xf32>
    %cst_21 = arith.constant dense<0.000000e+00> : vector<8x32xf32>
    %28 = tpu.matmul %5, %27, %cst_21 {dimension_numbers = #tpu.dot_dimension_numbers<[1], [0], [0], [1], [0, 0, 1, 1], [], []>} : vector<8x2xf32>, vector<2x32xf32>, vector<8x32xf32> -> vector<8x32xf32>
    %c0_22 = arith.constant 0 : index
    %c3_23 = arith.constant 3 : index
    %c0_24 = arith.constant 0 : index
    %29 = vector.load %arg7[%c0_22, %c3_23, %c0_24] : memref<8x8x32xf32, #tpu.memory_space<vmem>>, vector<8x1x32xf32>
    %30 = vector.shape_cast %29 : vector<8x1x32xf32> to vector<8x32xf32>
    %31 = vector.shape_cast %28 : vector<8x32xf32> to vector<8x1x32xf32>
    tpu.vector_store %arg7[%c0_22, %c3_23, %c0_24], %31 {strides = array<i32>} : memref<8x8x32xf32, #tpu.memory_space<vmem>>, vector<8x1x32xf32>,
    %c0_25 = arith.constant 0 : index
    %c4 = arith.constant 4 : index
    %c0_26 = arith.constant 0 : index
    %32 = vector.load %arg1[%c0_25, %c4, %c0_26] : memref<2x8x32xf32, #tpu.memory_space<vmem>>, vector<2x1x32xf32>
    %33 = vector.shape_cast %32 : vector<2x1x32xf32> to vector<2x32xf32>
    %cst_27 = arith.constant dense<0.000000e+00> : vector<8x32xf32>
    %34 = tpu.matmul %5, %33, %cst_27 {dimension_numbers = #tpu.dot_dimension_numbers<[1], [0], [0], [1], [0, 0, 1, 1], [], []>} : vector<8x2xf32>, vector<2x32xf32>, vector<8x32xf32> -> vector<8x32xf32>
    %c0_28 = arith.constant 0 : index
    %c4_29 = arith.constant 4 : index
    %c0_30 = arith.constant 0 : index
    %35 = vector.load %arg7[%c0_28, %c4_29, %c0_30] : memref<8x8x32xf32, #tpu.memory_space<vmem>>, vector<8x1x32xf32>
    %36 = vector.shape_cast %35 : vector<8x1x32xf32> to vector<8x32xf32>
    %37 = vector.shape_cast %34 : vector<8x32xf32> to vector<8x1x32xf32>
    tpu.vector_store %arg7[%c0_28, %c4_29, %c0_30], %37 {strides = array<i32>} : memref<8x8x32xf32, #tpu.memory_space<vmem>>, vector<8x1x32xf32>,
    %c0_31 = arith.constant 0 : index
    %c5 = arith.constant 5 : index
    %c0_32 = arith.constant 0 : index
    %38 = vector.load %arg1[%c0_31, %c5, %c0_32] : memref<2x8x32xf32, #tpu.memory_space<vmem>>, vector<2x1x32xf32>
    %39 = vector.shape_cast %38 : vector<2x1x32xf32> to vector<2x32xf32>
    %cst_33 = arith.constant dense<0.000000e+00> : vector<8x32xf32>
    %40 = tpu.matmul %5, %39, %cst_33 {dimension_numbers = #tpu.dot_dimension_numbers<[1], [0], [0], [1], [0, 0, 1, 1], [], []>} : vector<8x2xf32>, vector<2x32xf32>, vector<8x32xf32> -> vector<8x32xf32>
    %c0_34 = arith.constant 0 : index
    %c5_35 = arith.constant 5 : index
    %c0_36 = arith.constant 0 : index
    %41 = vector.load %arg7[%c0_34, %c5_35, %c0_36] : memref<8x8x32xf32, #tpu.memory_space<vmem>>, vector<8x1x32xf32>
    %42 = vector.shape_cast %41 : vector<8x1x32xf32> to vector<8x32xf32>
    %43 = vector.shape_cast %40 : vector<8x32xf32> to vector<8x1x32xf32>
    tpu.vector_store %arg7[%c0_34, %c5_35, %c0_36], %43 {strides = array<i32>} : memref<8x8x32xf32, #tpu.memory_space<vmem>>, vector<8x1x32xf32>,
    %c0_37 = arith.constant 0 : index
    %c6 = arith.constant 6 : index
    %c0_38 = arith.constant 0 : index
    %44 = vector.load %arg1[%c0_37, %c6, %c0_38] : memref<2x8x32xf32, #tpu.memory_space<vmem>>, vector<2x1x32xf32>
    %45 = vector.shape_cast %44 : vector<2x1x32xf32> to vector<2x32xf32>
    %cst_39 = arith.constant dense<0.000000e+00> : vector<8x32xf32>
    %46 = tpu.matmul %5, %45, %cst_39 {dimension_numbers = #tpu.dot_dimension_numbers<[1], [0], [0], [1], [0, 0, 1, 1], [], []>} : vector<8x2xf32>, vector<2x32xf32>, vector<8x32xf32> -> vector<8x32xf32>
    %c0_40 = arith.constant 0 : index
    %c6_41 = arith.constant 6 : index
    %c0_42 = arith.constant 0 : index
    %47 = vector.load %arg7[%c0_40, %c6_41, %c0_42] : memref<8x8x32xf32, #tpu.memory_space<vmem>>, vector<8x1x32xf32>
    %48 = vector.shape_cast %47 : vector<8x1x32xf32> to vector<8x32xf32>
    %49 = vector.shape_cast %46 : vector<8x32xf32> to vector<8x1x32xf32>
    tpu.vector_store %arg7[%c0_40, %c6_41, %c0_42], %49 {strides = array<i32>} : memref<8x8x32xf32, #tpu.memory_space<vmem>>, vector<8x1x32xf32>,
    %c0_43 = arith.constant 0 : index
    %c7 = arith.constant 7 : index
    %c0_44 = arith.constant 0 : index
    %50 = vector.load %arg1[%c0_43, %c7, %c0_44] : memref<2x8x32xf32, #tpu.memory_space<vmem>>, vector<2x1x32xf32>
    %51 = vector.shape_cast %50 : vector<2x1x32xf32> to vector<2x32xf32>
    %cst_45 = arith.constant dense<0.000000e+00> : vector<8x32xf32>
    %52 = tpu.matmul %5, %51, %cst_45 {dimension_numbers = #tpu.dot_dimension_numbers<[1], [0], [0], [1], [0, 0, 1, 1], [], []>} : vector<8x2xf32>, vector<2x32xf32>, vector<8x32xf32> -> vector<8x32xf32>
    %c0_46 = arith.constant 0 : index
    %c7_47 = arith.constant 7 : index
    %c0_48 = arith.constant 0 : index
    %53 = vector.load %arg7[%c0_46, %c7_47, %c0_48] : memref<8x8x32xf32, #tpu.memory_space<vmem>>, vector<8x1x32xf32>
    %54 = vector.shape_cast %53 : vector<8x1x32xf32> to vector<8x32xf32>
    %55 = vector.shape_cast %52 : vector<8x32xf32> to vector<8x1x32xf32>
    tpu.vector_store %arg7[%c0_46, %c7_47, %c0_48], %55 {strides = array<i32>} : memref<8x8x32xf32, #tpu.memory_space<vmem>>, vector<8x1x32xf32>,
    %c0_49 = arith.constant 0 : index
    %c0_50 = arith.constant 0 : index
    %c0_51 = arith.constant 0 : index
    %56 = vector.load %arg7[%c0_49, %c0_50, %c0_51] : memref<8x8x32xf32, #tpu.memory_space<vmem>>, vector<8x8x32xf32>
    %c0_52 = arith.constant 0 : index
    %c0_53 = arith.constant 0 : index
    %c0_54 = arith.constant 0 : index
    %57 = vector.load %arg3[%c0_52, %c0_53, %c0_54] : memref<8x16x32xf32, #tpu.memory_space<vmem>>, vector<8x16x32xf32>
    "tpu.trace_start"() <{level = 10 : i32, message = "nqd,nsd->nqs"}> : () -> ()
    %cst_55 = arith.constant dense<0.000000e+00> : vector<8x8x16xf32>
    %58 = tpu.matmul %56, %57, %cst_55 {dimension_numbers = #tpu.dot_dimension_numbers<[2], [2], [1], [1], [0, 0, 0, 1, 1, 1], [0], [0]>} : vector<8x8x32xf32>, vector<8x16x32xf32>, vector<8x8x16xf32> -> vector<8x8x16xf32>
    "tpu.trace_stop"() : () -> ()
    %c0_56 = arith.constant 0 : index
    %c0_57 = arith.constant 0 : index
    %59 = vector.load %arg4[%c0_56, %c0_57] : memref<8x16xi32, #tpu.memory_space<vmem>>, vector<8x16xi32>
    %c0_i32 = arith.constant 0 : i32
    %60 = vector.broadcast %c0_i32 : i32 to vector<8x16xi32>
    %61 = arith.cmpi sgt, %59, %60 : vector<8x16xi32>
    %62 = vector.shape_cast %61 : vector<8x16xi1> to vector<8x1x16xi1>
    %cst_58 = arith.constant 0xFF800000 : f32
    %63 = vector.shape_cast %62 : vector<8x1x16xi1> to vector<8x1x16xi1>
    %64 = vector.broadcast %63 : vector<8x1x16xi1> to vector<8x8x16xi1>
    %65 = vector.broadcast %cst_58 : f32 to vector<8x8x16xf32>
    %66 = arith.select %64, %58, %65 : vector<8x8x16xi1>, vector<8x8x16xf32>
    %cst_59 = arith.constant dense<0xFF800000> : vector<8x8xf32>
    %67 = vector.multi_reduction <maximumf>, %66, %cst_59 [2] : vector<8x8x16xf32> to vector<8x8xf32>
    %c0_60 = arith.constant 0 : index
    %c0_61 = arith.constant 0 : index
    %68 = vector.load %arg2[%c0_60, %c0_61] : memref<2x8xf32, #tpu.memory_space<vmem>>, vector<2x8xf32>
    %cst_62 = arith.constant dense<0.000000e+00> : vector<8x8xf32>
    %69 = tpu.matmul %7, %68, %cst_62 {dimension_numbers = #tpu.dot_dimension_numbers<[1], [0], [0], [1], [0, 0, 1, 1], [], []>} : vector<8x2xf32>, vector<2x8xf32>, vector<8x8xf32> -> vector<8x8xf32>
    %cst_63 = arith.constant 5.000000e-01 : f32
    %70 = vector.broadcast %cst_63 : f32 to vector<8x8xf32>
    %71 = arith.cmpf ogt, %69, %70 : vector<8x8xf32>
    %cst_64 = arith.constant 0.000000e+00 : f32
    %72 = vector.broadcast %cst_64 : f32 to vector<8x8xf32>
    %73 = arith.select %71, %67, %72 : vector<8x8xi1>, vector<8x8xf32>
    %cst_65 = arith.constant dense<0.000000e+00> : vector<8xf32>
    %74 = vector.multi_reduction <add>, %73, %cst_65 [1] : vector<8x8xf32> to vector<8xf32>
    %75 = vector.shape_cast %74 : vector<8xf32> to vector<8x1xf32>
    %c0_66 = arith.constant 0 : index
    %c0_67 = arith.constant 0 : index
    %76 = vector.load %arg6[%c0_66, %c0_67] : memref<8x1xf32, #tpu.memory_space<vmem>>, vector<8x1xf32>
    tpu.vector_store %arg6[%c0_66, %c0_67], %75 {strides = array<i32>} : memref<8x1xf32, #tpu.memory_space<vmem>>, vector<8x1xf32>,
    return
  }
  func.func @transform_0(%arg0: i32) -> (i32, i32, i32) {
    %c0_i32 = arith.constant 0 : i32
    %c0_i32_0 = arith.constant 0 : i32
    %c0_i32_1 = arith.constant 0 : i32
    %c0_i32_2 = arith.constant 0 : i32
    return %c0_i32, %c0_i32_0, %c0_i32_1 : i32, i32, i32
  }
  func.func @transform_1(%arg0: i32) -> (i32, i32) {
    %c0_i32 = arith.constant 0 : i32
    %c0_i32_0 = arith.constant 0 : i32
    %c0_i32_1 = arith.constant 0 : i32
    return %c0_i32, %c0_i32_0 : i32, i32
  }
  func.func @transform_2(%arg0: i32) -> (i32, i32, i32) {
    %c0_i32 = arith.constant 0 : i32
    %c0_i32_0 = arith.constant 0 : i32
    %c0_i32_1 = arith.constant 0 : i32
    return %arg0, %c0_i32, %c0_i32_0 : i32, i32, i32
  }
  func.func @transform_3(%arg0: i32) -> (i32, i32) {
    %c0_i32 = arith.constant 0 : i32
    %c0_i32_0 = arith.constant 0 : i32
    return %arg0, %c0_i32 : i32, i32
  }
  func.func @transform_4(%arg0: i32) -> (i32, i32) {
    %c0_i32 = arith.constant 0 : i32
    %c0_i32_0 = arith.constant 0 : i32
    return %arg0, %c0_i32 : i32, i32
  }
  func.func @transform_5(%arg0: i32) -> (i32, i32) {
    %c0_i32 = arith.constant 0 : i32
    %c0_i32_0 = arith.constant 0 : i32
    return %arg0, %c0_i32 : i32, i32
  }
}

</mosaic_0001>

<bundles_post_ra>
// kernel: tpu_custom_call.1
= control target key start
LH: loop header
LB: loop body
LE: loop exit
PB: predicated region body
PF: predicated region fallthrough
CT: control target
= control target key end

     0   :  { %10 = vsyncpa [#allocation4], 0  ;;  %s1223_s0 = inlined_call_operand.hbm [shape: f32[2,8,32], index: 0, kind: input, shape index: {}]   ;;  %s1224_s1 = inlined_call_operand.hbm [shape: f32[2,8], index: 1, kind: input, shape index: {}]   ;;  %s1225_s2 = inlined_call_operand.hbm [shape: f32[8,16,32], index: 2, kind: input, shape index: {}]   ;;  %s1226_s3 = inlined_call_operand.vmem [shape: s32[8,16], index: 3, kind: input, shape index: {}]   ;;  %s1227_s4 = inlined_call_operand.vmem [shape: s32[8,1], index: 4, kind: input, shape index: {}]   ;;  %s1228_s5 = inlined_call_operand.vmem [shape: f32[8,1], index: 5, kind: output, shape index: {}]  }
   0x1   :  { %11 = vsyncpa [#allocation6], 0  ;;  %s30_s20 = sshll.u32 %s1224_s1, 4  ;;  %s1014_s21 = smov [#allocation5]   ;;  %s31_s20 = int_to_ptr.hbm [resolvable:$true] %s30_s20 }
   0x2   :  { %s32_s22 = sshll.u32 %s1014_s21, 4  ;;  %s16_s25 = sshll.u32 %s1223_s0, 4  ;;  %s33_s22 = int_to_ptr.vmem [resolvable:$true] %s32_s22  ;;  %s17_s25 = int_to_ptr.hbm [resolvable:$true] %s16_s25 }
   0x3   :  { %35 = dma.hbm_to_vmem [thread:$0]  %s31_s20, 32, %s33_s22, [#allocation6]  }
   0x4   :  { %s1015_s26 = smov [#allocation3]   ;;  %s1016_s28 = smov 128  }
   0x5   :  { %s18_s27 = sshll.u32 %s1015_s26, 4  ;;  %s1017_s29 = smov 8   ;;  %s19_s27 = int_to_ptr.vmem [resolvable:$true] %s18_s27 }
   0x6   :  { %24 = dma.hbm_to_vmem [thread:$0]  %s17_s25, 256, %s19_s27, [#allocation4], %s1016_s28, %s1016_s28, %s1017_s29  }
   0x7   :  { %s40_s1 = sshll.u32 %s1225_s2, 4  ;;  %s1018_s7 = smov [#allocation7]   ;;  %s41_s1 = int_to_ptr.hbm [resolvable:$true] %s40_s1 }
   0x8   :  { %s42_s8 = sshll.u32 %s1018_s7, 4  ;;  %s43_s8 = int_to_ptr.vmem [resolvable:$true] %s42_s8 }
   0x9   :  { %48 = dma.hbm_to_vmem [thread:$0]  %s41_s1, 2048, %s43_s8, [#allocation6], %s1016_s28, %s1016_s28, %s1017_s29  }
   0xa   :  { %1010 = dma.done.wait [#allocation4], 256  }
   0xb   :  { %1011 = vsyncadd [#allocation4], 4294967040 }
   0xc   :  { %1012 = dma.done.wait [#allocation6], 2080  }
   0xd   :  { %1013 = vsyncadd [#allocation6], 4294965216  ;;  %v1019_v0 = vmov 0   ;;  %v65_v1 = vld [vmem:[%s1227_s4] sm:$0xff]  ;;  %v75_v2 = vld [vmem:[#allocation3 + $0x8] sm:$0x1]  ;;  %v66_v34 = vlaneseq }
   0xe   :  { %937 = vset.pattern.permute.xlu0 %v1019_v0  ;;  %v133_v3 = vld [vmem:[#allocation3 + $0x9] sm:$0x1]  ;;  %v184_v4 = vld [vmem:[#allocation3 + $0xa] sm:$0x1]  ;;  %v78_v5 = vrot.slane %v75_v2, 7  ;;  %vm79_vm0 = vcmask 1041409  }
   0xf   :  { %69 = vperm.xlu0 %937, %v65_v1   ;;  %v136_v6 = vrot.slane %v133_v3, 7  ;;  %v187_v7 = vrot.slane %v184_v4, 7  ;;  %v235_v8 = vld [vmem:[#allocation3 + $0xb] sm:$0x1]  ;;  %v74_v9 = vld [vmem:[#allocation3] sm:$0x1] }
  0x10   :  { %v132_v10 = vld [vmem:[#allocation3 + $0x1] sm:$0x1]  ;;  %v238_v11 = vrot.slane %v235_v8, 7  ;;  %v80_v12 = vsel %vm79_vm0, %v78_v5, %v74_v9  ;;  %vm85_vm1 = vcmask 1041408   ;;  %v183_v14 = vld [vmem:[#allocation3 + $0x2] sm:$0x1] }
  0x11   :  { %v137_v13 = vsel %vm79_vm0, %v136_v6, %v132_v10  ;;  %v234_v15 = vld [vmem:[#allocation3 + $0x3] sm:$0x1]  ;;  %888 = vmatpush.msk.msra.mxu0 %vm85_vm1, %v80_v12  ;;  %v188_v16 = vsel %vm79_vm0, %v187_v7, %v183_v14  ;;  %v387_v18 = vld [vmem:[#allocation3 + $0x6] sm:$0x1]  ;;  %v388_v19 = vld [vmem:[#allocation3 + $0xe] sm:$0x1] }
  0x12   :  { %890 = vmatpush.msk.msra.mxu1 %vm85_vm1, %v137_v13  ;;  %v239_v17 = vsel %vm79_vm0, %v238_v11, %v234_v15  ;;  %892 = vmatpush.msk.msra.mxu2 %vm85_vm1, %v188_v16  ;;  %v391_v20 = vrot.slane %v388_v19, 7  ;;  %v438_v21 = vld [vmem:[#allocation3 + $0x7] sm:$0x1]  ;;  %v439_v22 = vld [vmem:[#allocation3 + $0xf] sm:$0x1]  ;;  %v1080_v35 = vand.u32 127, %v66_v34 }
  0x13   :  { %894 = vmatpush.msk.msra.mxu3 %vm85_vm1, %v239_v17  ;;  %v442_v23 = vrot.slane %v439_v22, 7  ;;  %v285_v24 = vld [vmem:[#allocation3 + $0x4] sm:$0x1]  ;;  %v286_v25 = vld [vmem:[#allocation3 + $0xc] sm:$0x1]  ;;  %vm81_vm2 = vcmask 15360  }
  0x14   :  { %v392_v26 = vsel %vm79_vm0, %v391_v20, %v387_v18  ;;  %v289_v27 = vrot.slane %v286_v25, 7  ;;  %v336_v28 = vld [vmem:[#allocation3 + $0x5] sm:$0x1]  ;;  %v337_v29 = vld [vmem:[#allocation3 + $0xd] sm:$0x1]  ;;  %v1020_v37 = vmov 0.0  }
  0x15   :  { %900 = vmatpush.msk.msrb.mxu2 %vm85_vm1, %v392_v26  ;;  %v443_v30 = vsel %vm79_vm0, %v442_v23, %v438_v21  ;;  %v340_v31 = vrot.slane %v337_v29, 7  ;;  %vm123_vm4 = vcmask 253952   ;;  %v498_v10 = vld [vmem:[#allocation7 + $0x8] sm:$0xff]  ;;  %vm513_vm5 = vcmask 261120   ;;  %v500_v13 = vld [vmem:[#allocation7 + $0x18] sm:$0xff]  ;;  %v497_v17 = vld [vmem:[#allocation7] sm:$0xff] }
  0x16   :  { %902 = vmatpush.msk.msrb.mxu3 %vm85_vm1, %v443_v30  ;;  %v290_v32 = vsel %vm79_vm0, %v289_v27, %v285_v24  ;;  %v502_v14 = vld [vmem:[#allocation7 + $0x28] sm:$0xff]  ;;  %v504_v15 = vld [vmem:[#allocation7 + $0x38] sm:$0xff]  ;;  %v499_v19 = vld [vmem:[#allocation7 + $0x10] sm:$0xff]  ;;  %vm794_vm11 = vcmask 130048  }
  0x17   :  { %896 = vmatpush.msk.msrb.mxu0 %vm85_vm1, %v290_v32  ;;  %v341_v33 = vsel %vm79_vm0, %v340_v31, %v336_v28  ;;  %v501_v20 = vld [vmem:[#allocation7 + $0x20] sm:$0xff]  ;;  %v506_v21 = vld [vmem:[#allocation7 + $0x48] sm:$0xff]  ;;  %v503_v24 = vld [vmem:[#allocation7 + $0x30] sm:$0xff] }
  0x18   :  { %898 = vmatpush.msk.msrb.mxu1 %vm85_vm1, %v341_v33  ;;  %v508_v26 = vld [vmem:[#allocation7 + $0x58] sm:$0xff]  ;;  %v510_v27 = vld [vmem:[#allocation7 + $0x68] sm:$0xff]  ;;  %v505_v29 = vld [vmem:[#allocation7 + $0x40] sm:$0xff] }
  0x19   :  { %v512_v28 = vld [vmem:[#allocation7 + $0x78] sm:$0xff]  ;;  %v507_v32 = vld [vmem:[#allocation7 + $0x50] sm:$0xff]  ;;  %v509_v34 = vld [vmem:[#allocation7 + $0x60] sm:$0xff] }
  0x81   :  { %v70_v36 = vpop.permute.xlu0 %69 }
  0x82   :  { %vm71_vm3 = vcmp.eq.s32.totalorder %v70_v36, %v1080_v35  ;;  %v511_v36 = vld [vmem:[#allocation7 + $0x70] sm:$0xff] }
  0x83   :  { %v1083_v38 = vsel %vm71_vm3, 1.0, %v1020_v37 }
  0x84   :  { %889 = vmatmul.msk.f32.vlgmr.msra.gmra.mxu0 %vm81_vm2, %v1083_v38  ;;  %891 = vmatmul.msk.f32.vlgmr.msra.gmra.mxu1 %vm81_vm2, %v1083_v38 }
  0x85   :  { %893 = vmatmul.msk.f32.vlgmr.msra.gmra.mxu2 %vm81_vm2, %v1083_v38  ;;  %895 = vmatmul.msk.f32.vlgmr.msra.gmra.mxu3 %vm81_vm2, %v1083_v38 }
  0x86   :  { %904 = vmatpush.xpose.msk.msra.mxu0 %vm513_vm5, %v498_v10  ;;  %907 = vmatpush.xpose.msk.msra.mxu1 %vm513_vm5, %v500_v13 }
  0x87   :  { %910 = vmatpush.xpose.msk.msra.mxu2 %vm513_vm5, %v502_v14  ;;  %913 = vmatpush.xpose.msk.msra.mxu3 %vm513_vm5, %v504_v15 }
  0x8a   :  { %905 = vmatpush.xpose.msk.msra.mxu0 %vm513_vm5, %v497_v17  ;;  %908 = vmatpush.xpose.msk.msra.mxu1 %vm513_vm5, %v499_v19 }
  0x8b   :  { %911 = vmatpush.xpose.msk.msra.mxu2 %vm513_vm5, %v501_v20  ;;  %914 = vmatpush.xpose.msk.msra.mxu3 %vm513_vm5, %v503_v24 }
  0x8c   :  { %897 = vmatmul.msk.f32.vlgmr.msrb.gmra.mxu0 %vm81_vm2, %v1083_v38  ;;  %899 = vmatmul.msk.f32.vlgmr.msrb.gmra.mxu1 %vm81_vm2, %v1083_v38 }
  0x8d   :  { %901 = vmatmul.msk.f32.vlgmr.msrb.gmra.mxu2 %vm81_vm2, %v1083_v38  ;;  %903 = vmatmul.msk.f32.vlgmr.msrb.gmra.mxu3 %vm81_vm2, %v1083_v38 }
  0x8e   :  { %916 = vmatpush.xpose.msk.msrb.mxu0 %vm513_vm5, %v506_v21  ;;  %919 = vmatpush.xpose.msk.msrb.mxu1 %vm513_vm5, %v508_v26 }
  0x8f   :  { %922 = vmatpush.xpose.msk.msrb.mxu2 %vm513_vm5, %v510_v27  ;;  %925 = vmatpush.xpose.msk.msrb.mxu3 %vm513_vm5, %v512_v28 }
  0x92   :  { %917 = vmatpush.xpose.msk.msrb.mxu0 %vm513_vm5, %v505_v29  ;;  %920 = vmatpush.xpose.msk.msrb.mxu1 %vm513_vm5, %v507_v32 }
  0x93   :  { %923 = vmatpush.xpose.msk.msrb.mxu2 %vm513_vm5, %v509_v34  ;;  %926 = vmatpush.xpose.msk.msrb.mxu3 %vm513_vm5, %v511_v36 }
 0x101   :  { %v105_v39 = vpop.f32.mrf.mxu0  ;;  %v157_v40 = vpop.f32.mrf.mxu1 }
 0x102   :  { %v109_v41 = vrot.slane %v105_v39, 1  ;;  %v110_v42 = vrot.slane %v105_v39, 2  ;;  %v111_v43 = vrot.slane %v105_v39, 3  ;;  %124 = vst.msk [vmem:[#allocation2] sm:$0x1] %vm123_vm4, %v105_v39  ;;  %v112_v44 = vrot.slane %v105_v39, 4 }
 0x103   :  { %175 = vst.msk [vmem:[#allocation2 + $0x1] sm:$0x1] %vm123_vm4, %v157_v40  ;;  %v113_v45 = vrot.slane %v105_v39, 5  ;;  %v114_v46 = vrot.slane %v105_v39, 6  ;;  %v115_v47 = vrot.slane %v105_v39, 7  ;;  %v161_v48 = vrot.slane %v157_v40, 1 }
 0x104   :  { %125 = vst.msk [vmem:[#allocation2 + $0x8] sm:$0x1] %vm123_vm4, %v109_v41  ;;  %v162_v49 = vrot.slane %v157_v40, 2  ;;  %v163_v50 = vrot.slane %v157_v40, 3  ;;  %v164_v51 = vrot.slane %v157_v40, 4  ;;  %v165_v52 = vrot.slane %v157_v40, 5 }
 0x105   :  { %126 = vst.msk [vmem:[#allocation2 + $0x10] sm:$0x1] %vm123_vm4, %v110_v42  ;;  %v166_v53 = vrot.slane %v157_v40, 6  ;;  %v167_v55 = vrot.slane %v157_v40, 7 }
 0x106   :  { %127 = vst.msk [vmem:[#allocation2 + $0x18] sm:$0x1] %vm123_vm4, %v111_v43 }
 0x107   :  { %128 = vst.msk [vmem:[#allocation2 + $0x20] sm:$0x1] %vm123_vm4, %v112_v44 }
 0x108   :  { %129 = vst.msk [vmem:[#allocation2 + $0x28] sm:$0x1] %vm123_vm4, %v113_v45  ;;  %v208_v54 = vpop.f32.mrf.mxu2  ;;  %v259_v62 = vpop.f32.mrf.mxu3 }
 0x109   :  { %130 = vst.msk [vmem:[#allocation2 + $0x30] sm:$0x1] %vm123_vm4, %v114_v46  ;;  %v212_v56 = vrot.slane %v208_v54, 1  ;;  %v213_v57 = vrot.slane %v208_v54, 2  ;;  %v214_v58 = vrot.slane %v208_v54, 3  ;;  %v215_v59 = vrot.slane %v208_v54, 4  ;;  %v310_v7 = vpop.f32.mrf.mxu0  ;;  %v361_v23 = vpop.f32.mrf.mxu1 }
 0x10a   :  { %131 = vst.msk [vmem:[#allocation2 + $0x38] sm:$0x1] %vm123_vm4, %v115_v47  ;;  %v216_v60 = vrot.slane %v208_v54, 5  ;;  %v217_v61 = vrot.slane %v208_v54, 6  ;;  %v218_v63 = vrot.slane %v208_v54, 7  ;;  %v263_v1 = vrot.slane %v259_v62, 1 }
 0x10b   :  { %176 = vst.msk [vmem:[#allocation2 + $0x9] sm:$0x1] %vm123_vm4, %v161_v48  ;;  %v264_v2 = vrot.slane %v259_v62, 2  ;;  %v265_v3 = vrot.slane %v259_v62, 3  ;;  %v266_v4 = vrot.slane %v259_v62, 4  ;;  %v267_v5 = vrot.slane %v259_v62, 5 }
 0x10c   :  { %177 = vst.msk [vmem:[#allocation2 + $0x11] sm:$0x1] %vm123_vm4, %v162_v49  ;;  %v268_v6 = vrot.slane %v259_v62, 6  ;;  %v269_v8 = vrot.slane %v259_v62, 7  ;;  %v314_v9 = vrot.slane %v310_v7, 1  ;;  %v315_v11 = vrot.slane %v310_v7, 2 }
 0x10d   :  { %178 = vst.msk [vmem:[#allocation2 + $0x19] sm:$0x1] %vm123_vm4, %v163_v50  ;;  %v316_v12 = vrot.slane %v310_v7, 3  ;;  %v317_v16 = vrot.slane %v310_v7, 4  ;;  %v318_v18 = vrot.slane %v310_v7, 5  ;;  %v319_v22 = vrot.slane %v310_v7, 6 }
 0x10e   :  { %179 = vst.msk [vmem:[#allocation2 + $0x21] sm:$0x1] %vm123_vm4, %v164_v51  ;;  %v320_v25 = vrot.slane %v310_v7, 7  ;;  %v365_v30 = vrot.slane %v361_v23, 1  ;;  %v366_v31 = vrot.slane %v361_v23, 2  ;;  %v367_v33 = vrot.slane %v361_v23, 3 }
 0x10f   :  { %180 = vst.msk [vmem:[#allocation2 + $0x29] sm:$0x1] %vm123_vm4, %v165_v52  ;;  %v368_v37 = vrot.slane %v361_v23, 4  ;;  %v369_v39 = vrot.slane %v361_v23, 5  ;;  %v370_v40 = vrot.slane %v361_v23, 6  ;;  %v371_v42 = vrot.slane %v361_v23, 7 }
 0x110   :  { %181 = vst.msk [vmem:[#allocation2 + $0x31] sm:$0x1] %vm123_vm4, %v166_v53  ;;  %v412_v41 = vpop.f32.mrf.mxu2  ;;  %v463_v49 = vpop.f32.mrf.mxu3 }
 0x111   :  { %182 = vst.msk [vmem:[#allocation2 + $0x39] sm:$0x1] %vm123_vm4, %v167_v55  ;;  %v416_v43 = vrot.slane %v412_v41, 1  ;;  %v417_v44 = vrot.slane %v412_v41, 2  ;;  %v418_v45 = vrot.slane %v412_v41, 3  ;;  %v419_v46 = vrot.slane %v412_v41, 4 }
 0x112   :  { %226 = vst.msk [vmem:[#allocation2 + $0x2] sm:$0x1] %vm123_vm4, %v208_v54  ;;  %v420_v47 = vrot.slane %v412_v41, 5  ;;  %v421_v48 = vrot.slane %v412_v41, 6  ;;  %v422_v50 = vrot.slane %v412_v41, 7  ;;  %v467_v51 = vrot.slane %v463_v49, 1 }
 0x113   :  { %227 = vst.msk [vmem:[#allocation2 + $0xa] sm:$0x1] %vm123_vm4, %v212_v56  ;;  %v468_v52 = vrot.slane %v463_v49, 2  ;;  %v469_v53 = vrot.slane %v463_v49, 3  ;;  %v470_v54 = vrot.slane %v463_v49, 4  ;;  %v471_v55 = vrot.slane %v463_v49, 5 }
 0x114   :  { %228 = vst.msk [vmem:[#allocation2 + $0x12] sm:$0x1] %vm123_vm4, %v213_v57  ;;  %v472_v56 = vrot.slane %v463_v49, 6  ;;  %v473_v57 = vrot.slane %v463_v49, 7 }
 0x115   :  { %229 = vst.msk [vmem:[#allocation2 + $0x1a] sm:$0x1] %vm123_vm4, %v214_v58  ;;  %v819_v58 = vld [vmem:[#allocation5] sm:$0x3] }
 0x116   :  { %230 = vst.msk [vmem:[#allocation2 + $0x22] sm:$0x1] %vm123_vm4, %v215_v59 }
 0x117   :  { %231 = vst.msk [vmem:[#allocation2 + $0x2a] sm:$0x1] %vm123_vm4, %v216_v60 }
 0x118   :  { %232 = vst.msk [vmem:[#allocation2 + $0x32] sm:$0x1] %vm123_vm4, %v217_v61 }
 0x119   :  { %233 = vst.msk [vmem:[#allocation2 + $0x3a] sm:$0x1] %vm123_vm4, %v218_v63 }
 0x11a   :  { %277 = vst.msk [vmem:[#allocation2 + $0x3] sm:$0x1] %vm123_vm4, %v259_v62 }
 0x11b   :  { %278 = vst.msk [vmem:[#allocation2 + $0xb] sm:$0x1] %vm123_vm4, %v263_v1 }
 0x11c   :  { %279 = vst.msk [vmem:[#allocation2 + $0x13] sm:$0x1] %vm123_vm4, %v264_v2 }
 0x11d   :  { %280 = vst.msk [vmem:[#allocation2 + $0x1b] sm:$0x1] %vm123_vm4, %v265_v3 }
 0x11e   :  { %281 = vst.msk [vmem:[#allocation2 + $0x23] sm:$0x1] %vm123_vm4, %v266_v4  ;;  %v746_v4 = vld [vmem:[%s1226_s3] sm:$0xff] }
 0x11f   :  { %282 = vst.msk [vmem:[#allocation2 + $0x2b] sm:$0x1] %vm123_vm4, %v267_v5  ;;  %vm747_vm6 = vcmp.gt.s32.totalorder %v746_v4, 0 }
 0x120   :  { %283 = vst.msk [vmem:[#allocation2 + $0x33] sm:$0x1] %vm123_vm4, %v268_v6  ;;  %v748_v5 = vsel %vm747_vm6, 1, %v1019_v0 }
 0x121   :  { %284 = vst.msk [vmem:[#allocation2 + $0x3b] sm:$0x1] %vm123_vm4, %v269_v8  ;;  %v749_v6 = vrot.slane %v748_v5, 1  ;;  %v750_v8 = vrot.slane %v748_v5, 2  ;;  %v770_v10 = vperm.slane %v748_v5, 0  ;;  %v753_v13 = vrot.slane %v748_v5, 5 }
 0x122   :  { %328 = vst.msk [vmem:[#allocation2 + $0x4] sm:$0x1] %vm123_vm4, %v310_v7  ;;  %v755_v26 = vrot.slane %v748_v5, 7 }
 0x123   :  { %329 = vst.msk [vmem:[#allocation2 + $0xc] sm:$0x1] %vm123_vm4, %v314_v9  ;;  %vm756_vm7 = vcmp.ne.s32.totalorder %v749_v6, 0  ;;  %v751_v9 = vrot.slane %v748_v5, 3  ;;  %vm757_vm8 = vcmp.ne.s32.totalorder %v750_v8, 0  ;;  %vm778_vm10 = vcmp.eq.s32.totalorder %v770_v10, 1 }
 0x124   :  { %330 = vst.msk [vmem:[#allocation2 + $0x14] sm:$0x1] %vm123_vm4, %v315_v11  ;;  %v763_v7 = vsel %vm756_vm7, 1, %v1019_v0  ;;  %vm760_vm14 = vcmp.ne.s32.totalorder %v753_v13, 0  ;;  %vm762_vm3 = vcmp.ne.s32.totalorder %v755_v26, 0 }
 0x125   :  { %331 = vst.msk [vmem:[#allocation2 + $0x1c] sm:$0x1] %vm123_vm4, %v316_v12  ;;  %v771_v11 = vperm.slane %v763_v7, 0  ;;  %vm758_vm9 = vcmp.ne.s32.totalorder %v751_v9, 0  ;;  %v752_v12 = vrot.slane %v748_v5, 4  ;;  %v767_v24 = vsel %vm760_vm14, 1, %v1019_v0 }
 0x126   :  { %332 = vst.msk [vmem:[#allocation2 + $0x24] sm:$0x1] %vm123_vm4, %v317_v16  ;;  %v765_v15 = vsel %vm758_vm9, 1, %v1019_v0  ;;  %vm863_vm9 = vcmask 1043459  }
 0x127   :  { %333 = vst.msk [vmem:[#allocation2 + $0x2c] sm:$0x1] %vm123_vm4, %v318_v18  ;;  %vm779_vm12 = vcmp.eq.s32.totalorder %v771_v11, 1  ;;  %vm759_vm13 = vcmp.ne.s32.totalorder %v752_v12, 0 }
 0x128   :  { %334 = vst.msk [vmem:[#allocation2 + $0x34] sm:$0x1] %vm123_vm4, %v319_v22  ;;  %v773_v22 = vperm.slane %v765_v15, 0 }
 0x129   :  { %335 = vst.msk [vmem:[#allocation2 + $0x3c] sm:$0x1] %vm123_vm4, %v320_v25  ;;  %v754_v25 = vrot.slane %v748_v5, 6 }
 0x12a   :  { %379 = vst.msk [vmem:[#allocation2 + $0x5] sm:$0x1] %vm123_vm4, %v361_v23  ;;  %v766_v23 = vsel %vm759_vm13, 1, %v1019_v0  ;;  %vm875_vm13 = vcmask 64512  }
 0x12b   :  { %380 = vst.msk [vmem:[#allocation2 + $0xd] sm:$0x1] %vm123_vm4, %v365_v30  ;;  %v774_v30 = vperm.slane %v766_v23, 0 }
 0x12c   :  { %381 = vst.msk [vmem:[#allocation2 + $0x15] sm:$0x1] %vm123_vm4, %v366_v31  ;;  %v775_v31 = vperm.slane %v767_v24, 0 }
 0x12d   :  { %382 = vst.msk [vmem:[#allocation2 + $0x1d] sm:$0x1] %vm123_vm4, %v367_v33 }
 0x12e   :  { %383 = vst.msk [vmem:[#allocation2 + $0x25] sm:$0x1] %vm123_vm4, %v368_v37 }
 0x12f   :  { %384 = vst.msk [vmem:[#allocation2 + $0x2d] sm:$0x1] %vm123_vm4, %v369_v39 }
 0x130   :  { %385 = vst.msk [vmem:[#allocation2 + $0x35] sm:$0x1] %vm123_vm4, %v370_v40  ;;  %v769_v40 = vsel %vm762_vm3, 1, %v1019_v0 }
 0x131   :  { %386 = vst.msk [vmem:[#allocation2 + $0x3d] sm:$0x1] %vm123_vm4, %v371_v42 }
 0x132   :  { %430 = vst.msk [vmem:[#allocation2 + $0x6] sm:$0x1] %vm123_vm4, %v412_v41 }
 0x133   :  { %431 = vst.msk [vmem:[#allocation2 + $0xe] sm:$0x1] %vm123_vm4, %v416_v43 }
 0x134   :  { %432 = vst.msk [vmem:[#allocation2 + $0x16] sm:$0x1] %vm123_vm4, %v417_v44  ;;  %v777_v44 = vperm.slane %v769_v40, 0 }
 0x135   :  { %433 = vst.msk [vmem:[#allocation2 + $0x1e] sm:$0x1] %vm123_vm4, %v418_v45 }
 0x136   :  { %434 = vst.msk [vmem:[#allocation2 + $0x26] sm:$0x1] %vm123_vm4, %v419_v46  ;;  %vm785_vm7 = vcmp.eq.s32.totalorder %v777_v44, 1 }
 0x137   :  { %435 = vst.msk [vmem:[#allocation2 + $0x2e] sm:$0x1] %vm123_vm4, %v420_v47 }
 0x138   :  { %436 = vst.msk [vmem:[#allocation2 + $0x36] sm:$0x1] %vm123_vm4, %v421_v48 }
 0x139   :  { %437 = vst.msk [vmem:[#allocation2 + $0x3e] sm:$0x1] %vm123_vm4, %v422_v50 }
 0x13a   :  { %481 = vst.msk [vmem:[#allocation2 + $0x7] sm:$0x1] %vm123_vm4, %v463_v49 }
 0x13b   :  { %482 = vst.msk [vmem:[#allocation2 + $0xf] sm:$0x1] %vm123_vm4, %v467_v51 }
 0x13c   :  { %483 = vst.msk [vmem:[#allocation2 + $0x17] sm:$0x1] %vm123_vm4, %v468_v52 }
 0x13d   :  { %484 = vst.msk [vmem:[#allocation2 + $0x1f] sm:$0x1] %vm123_vm4, %v469_v53 }
 0x13e   :  { %485 = vst.msk [vmem:[#allocation2 + $0x27] sm:$0x1] %vm123_vm4, %v470_v54 }
 0x13f   :  { %486 = vst.msk [vmem:[#allocation2 + $0x2f] sm:$0x1] %vm123_vm4, %v471_v55 }
 0x140   :  { %487 = vst.msk [vmem:[#allocation2 + $0x37] sm:$0x1] %vm123_vm4, %v472_v56 }
 0x141   :  { %488 = vst.msk [vmem:[#allocation2 + $0x3f] sm:$0x1] %vm123_vm4, %v473_v57  ;;  %v489_v59 = vld [vmem:[#allocation2] sm:$0xff]  ;;  %vm782_vm4 = vcmp.eq.s32.totalorder %v774_v30, 1 }
 0x142   :  { %906 = vmatmul.msk.f32.vlgmr.msra.gmra.mxu0 %vm513_vm5, %v489_v59  ;;  %v490_v60 = vld [vmem:[#allocation2 + $0x8] sm:$0xff] }
 0x143   :  { %909 = vmatmul.msk.f32.vlgmr.msra.gmra.mxu1 %vm513_vm5, %v490_v60  ;;  %v491_v61 = vld [vmem:[#allocation2 + $0x10] sm:$0xff]  ;;  %928 = vmatpush.msk.msra.mxu0 %vm85_vm1, %v819_v58  ;;  %vm781_vm1 = vcmp.eq.s32.totalorder %v773_v22, 1 }
 0x144   :  { %912 = vmatmul.msk.f32.vlgmr.msra.gmra.mxu2 %vm513_vm5, %v491_v61  ;;  %v492_v62 = vld [vmem:[#allocation2 + $0x18] sm:$0xff] }
 0x145   :  { %915 = vmatmul.msk.f32.vlgmr.msra.gmra.mxu3 %vm513_vm5, %v492_v62  ;;  %v493_v63 = vld [vmem:[#allocation2 + $0x20] sm:$0xff] }
 0x146   :  { %v494_v1 = vld [vmem:[#allocation2 + $0x28] sm:$0xff] }
 0x147   :  { %v495_v2 = vld [vmem:[#allocation2 + $0x30] sm:$0xff] }
 0x148   :  { %v496_v3 = vld [vmem:[#allocation2 + $0x38] sm:$0xff] }
 0x14a   :  { %918 = vmatmul.msk.f32.vlgmr.msrb.gmra.mxu0 %vm513_vm5, %v493_v63 }
 0x14b   :  { %921 = vmatmul.msk.f32.vlgmr.msrb.gmra.mxu1 %vm513_vm5, %v494_v1 }
 0x14c   :  { %924 = vmatmul.msk.f32.vlgmr.msrb.gmra.mxu2 %vm513_vm5, %v495_v2 }
 0x14d   :  { %927 = vmatmul.msk.f32.vlgmr.msrb.gmra.mxu3 %vm513_vm5, %v496_v3  ;;  %vm783_vm5 = vcmp.eq.s32.totalorder %v775_v31, 1 }
 0x152   :  { %929 = vmatmul.msk.f32.vlgmr.msra.gmra.mxu0 %vm81_vm2, %v1083_v38  ;;  %v764_v38 = vsel %vm757_vm8, 1, %v1019_v0  ;;  %vm761_vm2 = vcmp.ne.s32.totalorder %v754_v25, 0  ;;  %vm861_vm8 = vcmask 1042434  }
 0x153   :  { %v772_v20 = vperm.slane %v764_v38, 0  ;;  %v768_v39 = vsel %vm761_vm2, 1, %v1019_v0 }
 0x154   :  { %v776_v43 = vperm.slane %v768_v39, 0 }
 0x155   :  { %vm780_vm15 = vcmp.eq.s32.totalorder %v772_v20, 1 }
 0x156   :  { %vm784_vm6 = vcmp.eq.s32.totalorder %v776_v43, 1 }
 0x1bf   :  { %v540_v14 = vpop.f32.mrf.mxu0 }
 0x1c0   :  { %v786_v16 = vsel %vm778_vm10, %v540_v14, -inf  ;;  %v569_v17 = vpop.f32.mrf.mxu1  ;;  %vm865_vm10 = vcmask 1044484  }
 0x1c1   :  { %v787_v18 = vsel %vm779_vm12, %v569_v17, -inf  ;;  %v795_v19 = vsel %vm794_vm11, %v786_v16, -inf  ;;  %vm869_vm12 = vcmask 1046534  }
 0x1c2   :  { %796 = vmax.xlane.f32.xlu0 %v795_v19  ;;  %v798_v21 = vsel %vm794_vm11, %v787_v18, -inf }
 0x1c3   :  { %799 = vmax.xlane.f32.xlu1 %v798_v21 }
 0x1c7   :  { %v598_v27 = vpop.f32.mrf.mxu2  ;;  %v656_v36 = vpop.f32.mrf.mxu0 }
 0x1c8   :  { %v788_v28 = vsel %vm780_vm15, %v598_v27, -inf  ;;  %v627_v29 = vpop.f32.mrf.mxu3  ;;  %v685_v37 = vpop.f32.mrf.mxu1  ;;  %v790_v41 = vsel %vm782_vm4, %v656_v36, -inf  ;;  %vm879_vm15 = vcmask 7168  }
 0x1c9   :  { %v789_v32 = vsel %vm781_vm1, %v627_v29, -inf  ;;  %v801_v34 = vsel %vm794_vm11, %v788_v28, -inf  ;;  %v791_v42 = vsel %vm783_vm5, %v685_v37, -inf  ;;  %v807_v45 = vsel %vm794_vm11, %v790_v41, -inf }
 0x1ca   :  { %v804_v33 = vsel %vm794_vm11, %v789_v32, -inf  ;;  %v810_v46 = vsel %vm794_vm11, %v791_v42, -inf }
 0x1cb   :  { %805 = vmax.xlane.f32.xlu2 %v804_v33  ;;  %802 = vmax.xlane.f32.xlu1 %v801_v34 }
 0x1cf   :  { %v714_v47 = vpop.f32.mrf.mxu2  ;;  %v840_v7 = vpop.f32.mrf.mxu0 }
 0x1d0   :  { %v743_v48 = vpop.f32.mrf.mxu3  ;;  %v792_v49 = vsel %vm784_vm6, %v714_v47, -inf  ;;  %vm843_vm14 = vcmp.gt.f32.partialorder %v840_v7, 0.5 }
 0x1d1   :  { %v793_v50 = vsel %vm785_vm7, %v743_v48, -inf  ;;  %v813_v51 = vsel %vm794_vm11, %v792_v49, -inf }
 0x1d2   :  { %v816_v0 = vsel %vm794_vm11, %v793_v50, -inf  ;;  %vm867_vm11 = vcmask 1045509  }
 0x1d3   :  { %808 = vmax.xlane.f32.xlu2 %v807_v45  ;;  %811 = vmax.xlane.f32.xlu1 %v810_v46 }
 0x1db   :  { %814 = vmax.xlane.f32.xlu2 %v813_v51  ;;  %817 = vmax.xlane.f32.xlu1 %v816_v0 }
 0x235   :  { %v797_v55 = vpop.xlane.xlu0 %796 }
 0x236   :  { %v800_v52 = vpop.xlane.xlu1 %799  ;;  %v852_v58 = vperm.slane %v797_v55, %v1080_v35 }
 0x237   :  { %v853_v56 = vperm.slane %v800_v52, %v1080_v35 }
 0x239   :  { %v860_v61 = vsel %vm79_vm0, %v853_v56, %v852_v58  ;;  %vm871_vm0 = vcmask 1047559  }
 0x23e   :  { %v806_v53 = vpop.xlane.xlu2 %805  ;;  %v803_v54 = vpop.xlane.xlu1 %802 }
 0x23f   :  { %v854_v57 = vperm.slane %v803_v54, %v1080_v35  ;;  %v855_v1 = vperm.slane %v806_v53, %v1080_v35 }
 0x241   :  { %v862_v62 = vsel %vm861_vm8, %v854_v57, %v860_v61 }
 0x242   :  { %v864_v2 = vsel %vm863_vm9, %v855_v1, %v862_v62 }
 0x246   :  { %v809_v59 = vpop.xlane.xlu2 %808  ;;  %v812_v60 = vpop.xlane.xlu1 %811 }
 0x247   :  { %v856_v63 = vperm.slane %v809_v59, %v1080_v35  ;;  %v857_v3 = vperm.slane %v812_v60, %v1080_v35 }
 0x249   :  { %v866_v4 = vsel %vm865_vm10, %v856_v63, %v864_v2 }
 0x24a   :  { %v868_v10 = vsel %vm867_vm11, %v857_v3, %v866_v4 }
 0x24e   :  { %v815_v5 = vpop.xlane.xlu2 %814  ;;  %v818_v6 = vpop.xlane.xlu1 %817 }
 0x24f   :  { %v858_v8 = vperm.slane %v815_v5, %v1080_v35  ;;  %v859_v9 = vperm.slane %v818_v6, %v1080_v35 }
 0x251   :  { %v870_v11 = vsel %vm869_vm12, %v858_v8, %v868_v10 }
 0x252   :  { %v872_v38 = vsel %vm871_vm0, %v859_v9, %v870_v11 }
 0x253   :  { %v874_v12 = vsel %vm843_vm14, %v872_v38, 0.0 }
 0x254   :  { %v876_v13 = vsel %vm875_vm13, %v874_v12, 0.0 }
 0x255   :  { %877 = vadd.xlane.f32.xlu2 %v876_v13 }
 0x2c8   :  { %v878_v14 = vpop.xlane.xlu2 %877 }
 0x2c9   :  { %880 = vst.msk [vmem:[%s1228_s5] sm:$0xff] %vm879_vm15, %v878_v14 }
 0x2ca   :  { %885 = vsyncpa [#allocation4], 1 }
 0x2cb   :  { %886 = vsyncpa [#allocation6], 1 }

</bundles_post_ra>
